<compile_context>
chip_gen: v7x
topology: tpu7x:2x2x1
jax: 0.10.0
libtpu: 0.0.40
codegen_flags: <defaults>
</compile_context>

<pallas_src>
import functools

import jax
import jax.numpy as jnp
from jax.experimental import pallas as pl
from jax.experimental.pallas import tpu as pltpu


# ----------------------------------------------------------------------------
# helpers
# ----------------------------------------------------------------------------
def _round_up(x: int, m: int) -> int:
    return (x + m - 1) // m * m


def _vmem_capacity_bytes() -> int:
    try:
        return int(pltpu.get_tpu_info().vmem_capacity_bytes)
    except Exception:
        return 64 * 1024 * 1024  # conservative (v7x per-TC)


def prepare_mlp_params(weights, biases, *, mxu_dtype=jnp.bfloat16, lane: int = 128):
    """One-time prep (outside the forward pass):
      * transpose PyTorch (out,in) weights -> (in,out)
      * zero-pad each layer's OUT dim independently to a multiple of `lane`
        (the next layer's K dim follows the previous padded OUT dim; the first
        K dim stays the true input_dim -- a full-extent block is always legal)
      * pre-cast weights to the MXU dtype (bf16 by default); biases stay f32.
    Zero padding is exact: padded weight rows/cols and bias entries are 0, so
    hidden pad columns stay 0 through every relu layer and the output pad
    columns are sliced off before the caller sees them.
    `lane=256` can be marginally better on v6e/v7x when true dims land in
    (128, 256]; 128 is correct everywhere."""
    w_dtype = jnp.float32 if mxu_dtype is None else mxu_dtype
    w_pads, b_pads = [], []
    k = int(weights[0].shape[1])  # true input dim, unpadded
    for w, b in zip(weights, biases):
        dout, din = int(w.shape[0]), int(w.shape[1])
        n = _round_up(dout, lane)
        wp = (jnp.zeros((k, n), w_dtype)
              .at[:din, :dout].set(jnp.transpose(w).astype(w_dtype)))
        bp = jnp.zeros((1, n), jnp.float32).at[0, :dout].set(b.astype(jnp.float32))
        w_pads.append(wp)
        b_pads.append(bp)
        k = n  # next layer's K = this layer's padded OUT
    return w_pads, b_pads


# ----------------------------------------------------------------------------
# fused kernel
# ----------------------------------------------------------------------------
def _fused_mlp_kernel(*refs, num_layers: int, sigmoid_output: bool, mxu_dtype):
    """refs = (x_ref, w_0..w_{L-1}, b_0..b_{L-1}, o_ref).

    x_ref : (tm, din)        VMEM  -- row tile of the flattened activations
    w_i   : (K_i, N_i)       VMEM  -- resident, pre-transposed / padded / pre-cast
    b_i   : (1,  N_i) f32    VMEM  -- resident
    o_ref : (tm, N_{L-1})    VMEM
    """
    x_ref = refs[0]
    w_refs = refs[1: 1 + num_layers]
    b_refs = refs[1 + num_layers: 1 + 2 * num_layers]
    o_ref = refs[1 + 2 * num_layers]

    h = x_ref[...].astype(jnp.float32)
    for layer in range(num_layers):
        lhs = h if mxu_dtype is None else h.astype(mxu_dtype)  # only MXU operands narrowed
        y = jnp.dot(lhs, w_refs[layer][...], preferred_element_type=jnp.float32)
        y = y + b_refs[layer][...]                 # (1, N) f32 broadcast over rows
        if layer < num_layers - 1:
            y = jnp.maximum(y, 0.0)                # VPU (f32), free vs. MXU slot
        elif sigmoid_output:
            y = jax.nn.sigmoid(y)                  # EUP slot, ~free
        h = y
    o_ref[...] = h.astype(o_ref.dtype)


# ----------------------------------------------------------------------------
# wrapper
# ----------------------------------------------------------------------------
def mlp_forward(x, w_pads, b_pads, output_dim, sigmoid_output: bool = False,
                mxu_dtype=jnp.bfloat16):
    """Replicates MLP.forward with a single fused pallas_call.

    x       : (..., input_dim)
    w_pads  : list of (K_i, N_i) pre-transposed / padded / pre-cast weights
    b_pads  : list of (1, N_i) f32 padded biases
    """
    num_layers = len(w_pads)
    lead_shape = x.shape[:-1]
    din = int(x.shape[-1])
    assert din == int(w_pads[0].shape[0]), "input dim mismatch with prepared weights"
    dout_p = int(w_pads[-1].shape[1])

    m = 1
    for s in lead_shape:
        m *= int(s)
    x2d = x.reshape(m, din)            # no materialized row/lane padding

    # ---- VMEM budgeting & row-tile selection -------------------------------
    cap = _vmem_capacity_bytes()
    budget = int(0.70 * cap)
    xb = jnp.dtype(x.dtype).itemsize
    max_w = max([din] + [int(w.shape[1]) for w in w_pads])
    # worst case (double-buffered resident weights) for the budget check
    resident = 2 * (sum(int(w.size) * jnp.dtype(w.dtype).itemsize for w in w_pads)
                    + sum(int(b.size) * 4 for b in b_pads))
    per_row = 2 * din * xb + 2 * dout_p * xb + 4 * max_w * 4  # in/out tiles + f32 working set

    tm = 512                                           # 512 ≈ 85%+ of roofline
    while tm > 64 and resident + tm * per_row > budget:
        tm //= 2
    if m <= tm:
        tm = _round_up(max(m, 1), 8)                   # single tile for small m
    grid = (pl.cdiv(m, tm),)                           # partial last block is masked

    needed = resident + tm * per_row
    vmem_limit = int(min(max(needed + (16 << 20), 32 << 20), int(0.9 * cap)))

    kernel = functools.partial(
        _fused_mlp_kernel,
        num_layers=num_layers,
        sigmoid_output=sigmoid_output,
        mxu_dtype=mxu_dtype,
    )
    out_shape = jax.ShapeDtypeStruct((m, dout_p), x.dtype)
    out_spec = pl.BlockSpec((tm, dout_p), lambda i: (i, 0))

    def _resident_spec(shape, single_buffer):
        if single_buffer:
            # Constant index_map -> the block is only DMA'd once; single buffer
            # halves the resident VMEM footprint (matters on v7x's 64 MiB/TC).
            return pl.BlockSpec(shape, lambda i: (0, 0),
                                pipeline_mode=pl.Buffered(buffer_count=1))
        return pl.BlockSpec(shape, lambda i: (0, 0))

    def _call(single_buffer):
        in_specs = [pl.BlockSpec((tm, din), lambda i: (i, 0))]
        for w in w_pads:
            in_specs.append(_resident_spec(tuple(int(s) for s in w.shape), single_buffer))
        for b in b_pads:
            in_specs.append(_resident_spec(tuple(int(s) for s in b.shape), single_buffer))
        return pl.pallas_call(
            kernel,
            out_shape=out_shape,
            grid=grid,
            in_specs=in_specs,
            out_specs=out_spec,
            compiler_params=pltpu.CompilerParams(
                dimension_semantics=("parallel",),   # shards row tiles across v7x TCs
                vmem_limit_bytes=vmem_limit,
            ),
        )(x2d, *w_pads, *b_pads)

    try:
        out = _call(True)
    except Exception:
        out = _call(False)   # older pipeline_mode support: default double-buffering

    if dout_p != output_dim:
        out = out[:, :output_dim]
    return out.reshape(*lead_shape, output_dim)


# ----------------------------------------------------------------------------
# deterministic synthetic params (matches the module's layer shapes)
# ----------------------------------------------------------------------------
def _init_params(key, input_dim, hidden_dim, output_dim, num_layers):
    hs = [hidden_dim] * (num_layers - 1)
    in_dims = [input_dim] + hs
    out_dims = hs + [output_dim]
    weights, biases = [], []
    for n, k_out in zip(in_dims, out_dims):
        key, kw, kb = jax.random.split(key, 3)
        bound = 1.0 / jnp.sqrt(jnp.float32(n))
        weights.append(jax.random.uniform(kw, (k_out, n), jnp.float32, -bound, bound))
        biases.append(jax.random.uniform(kb, (k_out,), jnp.float32, -bound, bound))
    return weights, biases


if __name__ == "__main__":
    # Small shapes consistent with the module: (batch, seq, input_dim) tokens,
    # heterogeneous dims to exercise per-layer padding + output slicing.
    batch, seq = 2, 8
    input_dim, hidden_dim, output_dim, num_layers = 32, 64, 16, 3
    sigmoid_output = True

    key = jax.random.PRNGKey(0)
    key, kx = jax.random.split(key)
    x = jax.random.normal(kx, (batch, seq, input_dim), jnp.float32)

    weights, biases = _init_params(key, input_dim, hidden_dim, output_dim, num_layers)

    # One-time param prep (transpose / pad / cast to bf16) -- outside forward.
    w_pads, b_pads = prepare_mlp_params(weights, biases, mxu_dtype=jnp.bfloat16)

    out = mlp_forward(x, w_pads, b_pads, output_dim,
                      sigmoid_output=sigmoid_output, mxu_dtype=jnp.bfloat16)
    out = jax.block_until_ready(out)

    # Pure-JAX reference mirroring the kernel's numerics (bf16 MXU operands,
    # f32 accumulation, f32 bias/relu/sigmoid).
    ref = x.reshape(-1, input_dim).astype(jnp.float32)
    for i, (w, b) in enumerate(zip(weights, biases)):
        ref = jnp.dot(ref.astype(jnp.bfloat16), jnp.transpose(w).astype(jnp.bfloat16),
                      preferred_element_type=jnp.float32) + b
        if i < num_layers - 1:
            ref = jnp.maximum(ref, 0.0)
    if sigmoid_output:
        ref = jax.nn.sigmoid(ref)
    ref = ref.reshape(batch, seq, output_dim)

    assert out.shape == (batch, seq, output_dim)
    assert jnp.allclose(out, ref, atol=1e-3, rtol=1e-3)

    print("KERNEL_OK")
</pallas_src>

<mosaic_0001>
module attributes {stable_mosaic.version = 11 : i64} {
  func.func @_fused_mlp_kernel(%arg0: i32, %arg1: memref<16x32xf32, #tpu.memory_space<vmem>>, %arg2: memref<32x128xbf16, #tpu.memory_space<vmem>>, %arg3: memref<128x128xbf16, #tpu.memory_space<vmem>>, %arg4: memref<128x128xbf16, #tpu.memory_space<vmem>>, %arg5: memref<1x128xf32, #tpu.memory_space<vmem>>, %arg6: memref<1x128xf32, #tpu.memory_space<vmem>>, %arg7: memref<1x128xf32, #tpu.memory_space<vmem>>, %arg8: memref<16x128xf32, #tpu.memory_space<vmem>>) attributes {dimension_semantics = [#tpu.dimension_semantics<parallel>], iteration_bounds = array<i64: 1>, scalar_prefetch = 0 : i64, scratch_operands = 0 : i64, tpu.core_type = #tpu.core_type<tc>, window_params = [{transform_indices = @transform_0, window_bounds = array<i64: 16, 32>}, {pipeline_mode = #tpu.pipeline_mode<synchronous>, transform_indices = @transform_1, window_bounds = array<i64: 32, 128>}, {pipeline_mode = #tpu.pipeline_mode<synchronous>, transform_indices = @transform_2, window_bounds = array<i64: 128, 128>}, {pipeline_mode = #tpu.pipeline_mode<synchronous>, transform_indices = @transform_3, window_bounds = array<i64: 128, 128>}, {pipeline_mode = #tpu.pipeline_mode<synchronous>, transform_indices = @transform_4, window_bounds = array<i64: 1, 128>}, {pipeline_mode = #tpu.pipeline_mode<synchronous>, transform_indices = @transform_5, window_bounds = array<i64: 1, 128>}, {pipeline_mode = #tpu.pipeline_mode<synchronous>, transform_indices = @transform_6, window_bounds = array<i64: 1, 128>}, {transform_indices = @transform_7, window_bounds = array<i64: 16, 128>}]} {
    %c0 = arith.constant 0 : index
    %c0_0 = arith.constant 0 : index
    %0 = vector.load %arg1[%c0, %c0_0] : memref<16x32xf32, #tpu.memory_space<vmem>>, vector<16x32xf32>
    %1 = arith.truncf %0 : vector<16x32xf32> to vector<16x32xbf16>
    %c0_1 = arith.constant 0 : index
    %c0_2 = arith.constant 0 : index
    %2 = vector.load %arg2[%c0_1, %c0_2] : memref<32x128xbf16, #tpu.memory_space<vmem>>, vector<32x128xbf16>
    %cst = arith.constant dense<0.000000e+00> : vector<16x128xf32>
    %3 = tpu.matmul %1, %2, %cst {dimension_numbers = #tpu.dot_dimension_numbers<[1], [0], [0], [1], [0, 0, 1, 1], [], []>} : vector<16x32xbf16>, vector<32x128xbf16>, vector<16x128xf32> -> vector<16x128xf32>
    %c0_3 = arith.constant 0 : index
    %c0_4 = arith.constant 0 : index
    %4 = vector.load %arg5[%c0_3, %c0_4] : memref<1x128xf32, #tpu.memory_space<vmem>>, vector<1x128xf32>
    %5 = vector.broadcast %4 : vector<1x128xf32> to vector<16x128xf32>
    %6 = arith.addf %3, %5 : vector<16x128xf32>
    %cst_5 = arith.constant 0.000000e+00 : f32
    %7 = vector.broadcast %cst_5 : f32 to vector<16x128xf32>
    %8 = arith.maximumf %6, %7 : vector<16x128xf32>
    %9 = arith.truncf %8 : vector<16x128xf32> to vector<16x128xbf16>
    %c0_6 = arith.constant 0 : index
    %c0_7 = arith.constant 0 : index
    %10 = vector.load %arg3[%c0_6, %c0_7] : memref<128x128xbf16, #tpu.memory_space<vmem>>, vector<128x128xbf16>
    %cst_8 = arith.constant dense<0.000000e+00> : vector<16x128xf32>
    %11 = tpu.matmul %9, %10, %cst_8 {dimension_numbers = #tpu.dot_dimension_numbers<[1], [0], [0], [1], [0, 0, 1, 1], [], []>} : vector<16x128xbf16>, vector<128x128xbf16>, vector<16x128xf32> -> vector<16x128xf32>
    %c0_9 = arith.constant 0 : index
    %c0_10 = arith.constant 0 : index
    %12 = vector.load %arg6[%c0_9, %c0_10] : memref<1x128xf32, #tpu.memory_space<vmem>>, vector<1x128xf32>
    %13 = vector.broadcast %12 : vector<1x128xf32> to vector<16x128xf32>
    %14 = arith.addf %11, %13 : vector<16x128xf32>
    %cst_11 = arith.constant 0.000000e+00 : f32
    %15 = vector.broadcast %cst_11 : f32 to vector<16x128xf32>
    %16 = arith.maximumf %14, %15 : vector<16x128xf32>
    %17 = arith.truncf %16 : vector<16x128xf32> to vector<16x128xbf16>
    %c0_12 = arith.constant 0 : index
    %c0_13 = arith.constant 0 : index
    %18 = vector.load %arg4[%c0_12, %c0_13] : memref<128x128xbf16, #tpu.memory_space<vmem>>, vector<128x128xbf16>
    %cst_14 = arith.constant dense<0.000000e+00> : vector<16x128xf32>
    %19 = tpu.matmul %17, %18, %cst_14 {dimension_numbers = #tpu.dot_dimension_numbers<[1], [0], [0], [1], [0, 0, 1, 1], [], []>} : vector<16x128xbf16>, vector<128x128xbf16>, vector<16x128xf32> -> vector<16x128xf32>
    %c0_15 = arith.constant 0 : index
    %c0_16 = arith.constant 0 : index
    %20 = vector.load %arg7[%c0_15, %c0_16] : memref<1x128xf32, #tpu.memory_space<vmem>>, vector<1x128xf32>
    %21 = vector.broadcast %20 : vector<1x128xf32> to vector<16x128xf32>
    %22 = arith.addf %19, %21 : vector<16x128xf32>
    %23 = arith.negf %22 : vector<16x128xf32>
    %24 = math.exp %23 : vector<16x128xf32>
    %cst_17 = arith.constant 1.000000e+00 : f32
    %25 = vector.broadcast %cst_17 : f32 to vector<16x128xf32>
    %26 = arith.addf %25, %24 : vector<16x128xf32>
    %27 = arith.divf %25, %26 : vector<16x128xf32>
    %c0_18 = arith.constant 0 : index
    %c0_19 = arith.constant 0 : index
    %28 = vector.load %arg8[%c0_18, %c0_19] : memref<16x128xf32, #tpu.memory_space<vmem>>, vector<16x128xf32>
    tpu.vector_store %arg8[%c0_18, %c0_19], %27 {strides = array<i32>} : memref<16x128xf32, #tpu.memory_space<vmem>>, vector<16x128xf32>,
    return
  }
  func.func @transform_0(%arg0: i32) -> (i32, i32) {
    %c0_i32 = arith.constant 0 : i32
    %c0_i32_0 = arith.constant 0 : i32
    return %arg0, %c0_i32 : i32, i32
  }
  func.func @transform_1(%arg0: i32) -> (i32, i32) {
    %c0_i32 = arith.constant 0 : i32
    %c0_i32_0 = arith.constant 0 : i32
    %c0_i32_1 = arith.constant 0 : i32
    return %c0_i32, %c0_i32_0 : i32, i32
  }
  func.func @transform_2(%arg0: i32) -> (i32, i32) {
    %c0_i32 = arith.constant 0 : i32
    %c0_i32_0 = arith.constant 0 : i32
    %c0_i32_1 = arith.constant 0 : i32
    return %c0_i32, %c0_i32_0 : i32, i32
  }
  func.func @transform_3(%arg0: i32) -> (i32, i32) {
    %c0_i32 = arith.constant 0 : i32
    %c0_i32_0 = arith.constant 0 : i32
    %c0_i32_1 = arith.constant 0 : i32
    return %c0_i32, %c0_i32_0 : i32, i32
  }
  func.func @transform_4(%arg0: i32) -> (i32, i32) {
    %c0_i32 = arith.constant 0 : i32
    %c0_i32_0 = arith.constant 0 : i32
    %c0_i32_1 = arith.constant 0 : i32
    return %c0_i32, %c0_i32_0 : i32, i32
  }
  func.func @transform_5(%arg0: i32) -> (i32, i32) {
    %c0_i32 = arith.constant 0 : i32
    %c0_i32_0 = arith.constant 0 : i32
    %c0_i32_1 = arith.constant 0 : i32
    return %c0_i32, %c0_i32_0 : i32, i32
  }
  func.func @transform_6(%arg0: i32) -> (i32, i32) {
    %c0_i32 = arith.constant 0 : i32
    %c0_i32_0 = arith.constant 0 : i32
    %c0_i32_1 = arith.constant 0 : i32
    return %c0_i32, %c0_i32_0 : i32, i32
  }
  func.func @transform_7(%arg0: i32) -> (i32, i32) {
    %c0_i32 = arith.constant 0 : i32
    %c0_i32_0 = arith.constant 0 : i32
    return %arg0, %c0_i32 : i32, i32
  }
}

module attributes {stable_mosaic.version = 11 : i64} {
  func.func @_fused_mlp_kernel(%arg0: i32, %arg1: memref<16x32xf32, #tpu.memory_space<vmem>>, %arg2: memref<32x128xbf16, #tpu.memory_space<vmem>>, %arg3: memref<128x128xbf16, #tpu.memory_space<vmem>>, %arg4: memref<128x128xbf16, #tpu.memory_space<vmem>>, %arg5: memref<1x128xf32, #tpu.memory_space<vmem>>, %arg6: memref<1x128xf32, #tpu.memory_space<vmem>>, %arg7: memref<1x128xf32, #tpu.memory_space<vmem>>, %arg8: memref<16x128xf32, #tpu.memory_space<vmem>>) attributes {dimension_semantics = [#tpu.dimension_semantics<parallel>], iteration_bounds = array<i64: 1>, scalar_prefetch = 0 : i64, scratch_operands = 0 : i64, tpu.core_type = #tpu.core_type<tc>, window_params = [{transform_indices = @transform_0, window_bounds = array<i64: 16, 32>}, {pipeline_mode = #tpu.pipeline_mode<synchronous>, transform_indices = @transform_1, window_bounds = array<i64: 32, 128>}, {pipeline_mode = #tpu.pipeline_mode<synchronous>, transform_indices = @transform_2, window_bounds = array<i64: 128, 128>}, {pipeline_mode = #tpu.pipeline_mode<synchronous>, transform_indices = @transform_3, window_bounds = array<i64: 128, 128>}, {pipeline_mode = #tpu.pipeline_mode<synchronous>, transform_indices = @transform_4, window_bounds = array<i64: 1, 128>}, {pipeline_mode = #tpu.pipeline_mode<synchronous>, transform_indices = @transform_5, window_bounds = array<i64: 1, 128>}, {pipeline_mode = #tpu.pipeline_mode<synchronous>, transform_indices = @transform_6, window_bounds = array<i64: 1, 128>}, {transform_indices = @transform_7, window_bounds = array<i64: 16, 128>}]} {
    %c0 = arith.constant 0 : index
    %c0_0 = arith.constant 0 : index
    %0 = vector.load %arg1[%c0, %c0_0] : memref<16x32xf32, #tpu.memory_space<vmem>>, vector<16x32xf32>
    %1 = arith.truncf %0 : vector<16x32xf32> to vector<16x32xbf16>
    %c0_1 = arith.constant 0 : index
    %c0_2 = arith.constant 0 : index
    %2 = vector.load %arg2[%c0_1, %c0_2] : memref<32x128xbf16, #tpu.memory_space<vmem>>, vector<32x128xbf16>
    %cst = arith.constant dense<0.000000e+00> : vector<16x128xf32>
    %3 = tpu.matmul %1, %2, %cst {dimension_numbers = #tpu.dot_dimension_numbers<[1], [0], [0], [1], [0, 0, 1, 1], [], []>} : vector<16x32xbf16>, vector<32x128xbf16>, vector<16x128xf32> -> vector<16x128xf32>
    %c0_3 = arith.constant 0 : index
    %c0_4 = arith.constant 0 : index
    %4 = vector.load %arg5[%c0_3, %c0_4] : memref<1x128xf32, #tpu.memory_space<vmem>>, vector<1x128xf32>
    %5 = vector.broadcast %4 : vector<1x128xf32> to vector<16x128xf32>
    %6 = arith.addf %3, %5 : vector<16x128xf32>
    %cst_5 = arith.constant 0.000000e+00 : f32
    %7 = vector.broadcast %cst_5 : f32 to vector<16x128xf32>
    %8 = arith.maximumf %6, %7 : vector<16x128xf32>
    %9 = arith.truncf %8 : vector<16x128xf32> to vector<16x128xbf16>
    %c0_6 = arith.constant 0 : index
    %c0_7 = arith.constant 0 : index
    %10 = vector.load %arg3[%c0_6, %c0_7] : memref<128x128xbf16, #tpu.memory_space<vmem>>, vector<128x128xbf16>
    %cst_8 = arith.constant dense<0.000000e+00> : vector<16x128xf32>
    %11 = tpu.matmul %9, %10, %cst_8 {dimension_numbers = #tpu.dot_dimension_numbers<[1], [0], [0], [1], [0, 0, 1, 1], [], []>} : vector<16x128xbf16>, vector<128x128xbf16>, vector<16x128xf32> -> vector<16x128xf32>
    %c0_9 = arith.constant 0 : index
    %c0_10 = arith.constant 0 : index
    %12 = vector.load %arg6[%c0_9, %c0_10] : memref<1x128xf32, #tpu.memory_space<vmem>>, vector<1x128xf32>
    %13 = vector.broadcast %12 : vector<1x128xf32> to vector<16x128xf32>
    %14 = arith.addf %11, %13 : vector<16x128xf32>
    %cst_11 = arith.constant 0.000000e+00 : f32
    %15 = vector.broadcast %cst_11 : f32 to vector<16x128xf32>
    %16 = arith.maximumf %14, %15 : vector<16x128xf32>
    %17 = arith.truncf %16 : vector<16x128xf32> to vector<16x128xbf16>
    %c0_12 = arith.constant 0 : index
    %c0_13 = arith.constant 0 : index
    %18 = vector.load %arg4[%c0_12, %c0_13] : memref<128x128xbf16, #tpu.memory_space<vmem>>, vector<128x128xbf16>
    %cst_14 = arith.constant dense<0.000000e+00> : vector<16x128xf32>
    %19 = tpu.matmul %17, %18, %cst_14 {dimension_numbers = #tpu.dot_dimension_numbers<[1], [0], [0], [1], [0, 0, 1, 1], [], []>} : vector<16x128xbf16>, vector<128x128xbf16>, vector<16x128xf32> -> vector<16x128xf32>
    %c0_15 = arith.constant 0 : index
    %c0_16 = arith.constant 0 : index
    %20 = vector.load %arg7[%c0_15, %c0_16] : memref<1x128xf32, #tpu.memory_space<vmem>>, vector<1x128xf32>
    %21 = vector.broadcast %20 : vector<1x128xf32> to vector<16x128xf32>
    %22 = arith.addf %19, %21 : vector<16x128xf32>
    %23 = arith.negf %22 : vector<16x128xf32>
    %24 = math.exp %23 : vector<16x128xf32>
    %cst_17 = arith.constant 1.000000e+00 : f32
    %25 = vector.broadcast %cst_17 : f32 to vector<16x128xf32>
    %26 = arith.addf %25, %24 : vector<16x128xf32>
    %27 = arith.divf %25, %26 : vector<16x128xf32>
    %c0_18 = arith.constant 0 : index
    %c0_19 = arith.constant 0 : index
    %28 = vector.load %arg8[%c0_18, %c0_19] : memref<16x128xf32, #tpu.memory_space<vmem>>, vector<16x128xf32>
    tpu.vector_store %arg8[%c0_18, %c0_19], %27 {strides = array<i32>} : memref<16x128xf32, #tpu.memory_space<vmem>>, vector<16x128xf32>,
    return
  }
  func.func @transform_0(%arg0: i32) -> (i32, i32) {
    %c0_i32 = arith.constant 0 : i32
    %c0_i32_0 = arith.constant 0 : i32
    return %arg0, %c0_i32 : i32, i32
  }
  func.func @transform_1(%arg0: i32) -> (i32, i32) {
    %c0_i32 = arith.constant 0 : i32
    %c0_i32_0 = arith.constant 0 : i32
    %c0_i32_1 = arith.constant 0 : i32
    return %c0_i32, %c0_i32_0 : i32, i32
  }
  func.func @transform_2(%arg0: i32) -> (i32, i32) {
    %c0_i32 = arith.constant 0 : i32
    %c0_i32_0 = arith.constant 0 : i32
    %c0_i32_1 = arith.constant 0 : i32
    return %c0_i32, %c0_i32_0 : i32, i32
  }
  func.func @transform_3(%arg0: i32) -> (i32, i32) {
    %c0_i32 = arith.constant 0 : i32
    %c0_i32_0 = arith.constant 0 : i32
    %c0_i32_1 = arith.constant 0 : i32
    return %c0_i32, %c0_i32_0 : i32, i32
  }
  func.func @transform_4(%arg0: i32) -> (i32, i32) {
    %c0_i32 = arith.constant 0 : i32
    %c0_i32_0 = arith.constant 0 : i32
    %c0_i32_1 = arith.constant 0 : i32
    return %c0_i32, %c0_i32_0 : i32, i32
  }
  func.func @transform_5(%arg0: i32) -> (i32, i32) {
    %c0_i32 = arith.constant 0 : i32
    %c0_i32_0 = arith.constant 0 : i32
    %c0_i32_1 = arith.constant 0 : i32
    return %c0_i32, %c0_i32_0 : i32, i32
  }
  func.func @transform_6(%arg0: i32) -> (i32, i32) {
    %c0_i32 = arith.constant 0 : i32
    %c0_i32_0 = arith.constant 0 : i32
    %c0_i32_1 = arith.constant 0 : i32
    return %c0_i32, %c0_i32_0 : i32, i32
  }
  func.func @transform_7(%arg0: i32) -> (i32, i32) {
    %c0_i32 = arith.constant 0 : i32
    %c0_i32_0 = arith.constant 0 : i32
    return %arg0, %c0_i32 : i32, i32
  }
}

</mosaic_0001>

<bundles_post_ra>
// kernel: tpu_custom_call.1
= control target key start
LH: loop header
LB: loop body
LE: loop exit
PB: predicated region body
PF: predicated region fallthrough
CT: control target
= control target key end

     0   :  { %12 = vsyncpa [#allocation3], 0  ;;  %s831_s0 = inlined_call_operand.hbm [shape: f32[16,32], index: 0, kind: input, shape index: {}]   ;;  %s832_s1 = inlined_call_operand.hbm [shape: bf16[32,128], index: 1, kind: input, shape index: {}]   ;;  %s833_s2 = inlined_call_operand.hbm [shape: bf16[128,128], index: 2, kind: input, shape index: {}]   ;;  %s834_s3 = inlined_call_operand.hbm [shape: bf16[128,128], index: 3, kind: input, shape index: {}]   ;;  %s835_s4 = inlined_call_operand.vmem [shape: f32[1,128], index: 4, kind: input, shape index: {}]   ;;  %s836_s5 = inlined_call_operand.vmem [shape: f32[1,128], index: 5, kind: input, shape index: {}]   ;;  %s837_s6 = inlined_call_operand.vmem [shape: f32[1,128], index: 6, kind: input, shape index: {}]   ;;  %s838_s7 = inlined_call_operand.hbm [shape: f32[16,128], index: 7, kind: output, shape index: {}]  }
   0x1   :  { %13 = vsyncpa [#allocation6], 0 }
   0x2   :  { %14 = vsyncpa [#allocation9], 0 }
   0x3   :  { %15 = vsyncpa [#allocation4], 0  ;;  %s665_s24 = smov [#allocation5]   ;;  %s547_s28 = scalar_lea.hbm %s832_s1, 256 }
   0x4   :  { %s33_s25 = sshll.u32 %s665_s24, 4  ;;  %p548_p0 = scmp.ne.s32.totalorder %s832_s1, %s547_s28  ;;  %s34_s25 = int_to_ptr.vmem [resolvable:$true] %s33_s25 }
   0x5   :  { %p551_p1 = scmp.lt.u32.totalorder %s547_s28, %s832_s1 }
   0x7   :  { %p553_p2 = pnand %p551_p1, %p548_p0 }
   0x9   :  { %556 = shalt.err (!%p553_p2)
}
   0xa   :  { %s557_s10 = scalar_lea.vmem %s34_s25, 256  ;;  %p562_p4 = scmp.lt.s32.totalorder %s34_s25, %s34_s25 }
   0xb   :  { %p558_p3 = scmp.ne.s32.totalorder %s34_s25, %s557_s10  ;;  %p563_p5 = scmp.lt.s32.totalorder %s557_s10, %s557_s10 }
   0xd   :  { %p564_p6 = por %p563_p5, %p562_p4 }
   0xf   :  { %p565_p7 = pnand %p564_p6, %p558_p3 }
  0x11   :  { %568 = shalt.err (!%p565_p7)
}
  0x12   :  { %s666_s11 = smov 64   ;;  %s667_s12 = smov 4  }
  0x13   :  { %39 = dma.hbm_to_vmem [thread:$0]  %s832_s1, 256, %s34_s25, [#allocation6], %s666_s11, %s666_s11, %s667_s12  }
  0x14   :  { %s668_s15 = smov [#allocation2]   ;;  %s569_s19 = scalar_lea.hbm %s831_s0, 256 }
  0x15   :  { %s21_s16 = sshll.u32 %s668_s15, 4  ;;  %p570_p8 = scmp.ne.s32.totalorder %s831_s0, %s569_s19  ;;  %s22_s16 = int_to_ptr.vmem [resolvable:$true] %s21_s16 }
  0x16   :  { %p573_p9 = scmp.lt.u32.totalorder %s569_s19, %s831_s0 }
  0x18   :  { %p575_p10 = pnand %p573_p9, %p570_p8 }
  0x1a   :  { %578 = shalt.err (!%p575_p10)
}
  0x1b   :  { %s579_s24 = scalar_lea.vmem %s22_s16, 256  ;;  %p584_p12 = scmp.lt.s32.totalorder %s22_s16, %s22_s16 }
  0x1c   :  { %p580_p11 = scmp.ne.s32.totalorder %s22_s16, %s579_s24  ;;  %p585_p13 = scmp.lt.s32.totalorder %s579_s24, %s579_s24 }
  0x1e   :  { %p586_p0 = por %p585_p13, %p584_p12 }
  0x20   :  { %p587_p1 = pnand %p586_p0, %p580_p11 }
  0x22   :  { %590 = shalt.err (!%p587_p1)
}
  0x23   :  { %s669_s1 = smov 128   ;;  %s670_s25 = smov 8  }
  0x24   :  { %27 = dma.hbm_to_vmem [thread:$0]  %s831_s0, 256, %s22_s16, [#allocation3], %s669_s1, %s669_s1, %s670_s25  }
  0x25   :  { %s671_s28 = smov [#allocation7]   ;;  %s672_s30 = smov [#allocation8]  }
  0x26   :  { %s45_s29 = sshll.u32 %s671_s28, 4  ;;  %s57_s8 = sshll.u32 %s672_s30, 4  ;;  %s46_s29 = int_to_ptr.vmem [resolvable:$true] %s45_s29  ;;  %s746_s8 = int_to_ptr.vmem [resolvable:$true] %s57_s8 }
  0x27   :  { %s591_s13 = scalar_lea.hbm %s833_s2, 1024 }
  0x28   :  { %p592_p2 = scmp.ne.s32.totalorder %s833_s2, %s591_s13  ;;  %p595_p3 = scmp.lt.u32.totalorder %s591_s13, %s833_s2 }
  0x2a   :  { %p597_p4 = pnand %p595_p3, %p592_p2 }
  0x2c   :  { %600 = shalt.err (!%p597_p4)
}
  0x2d   :  { %s601_s0 = scalar_lea.vmem %s46_s29, 1024  ;;  %p606_p6 = scmp.lt.s32.totalorder %s46_s29, %s46_s29 }
  0x2e   :  { %p602_p5 = scmp.ne.s32.totalorder %s46_s29, %s601_s0  ;;  %p607_p7 = scmp.lt.s32.totalorder %s601_s0, %s601_s0 }
  0x30   :  { %p608_p8 = por %p607_p7, %p606_p6 }
  0x32   :  { %p609_p9 = pnand %p608_p8, %p602_p5 }
  0x34   :  { %612 = shalt.err (!%p609_p9)
}
  0x35   :  { %51 = dma.hbm_to_vmem [thread:$0]  %s833_s2, 1024, %s46_s29, [#allocation6], %s666_s11, %s666_s11, %s667_s12  }
  0x36   :  { %s613_s22 = scalar_lea.hbm %s834_s3, 1024 }
  0x37   :  { %p614_p10 = scmp.ne.s32.totalorder %s834_s3, %s613_s22  ;;  %p617_p11 = scmp.lt.u32.totalorder %s613_s22, %s834_s3 }
  0x39   :  { %p619_p12 = pnand %p617_p11, %p614_p10 }
  0x3b   :  { %622 = shalt.err (!%p619_p12)
}
  0x3c   :  { %s623_s28 = scalar_lea.vmem %s746_s8, 1024  ;;  %p628_p0 = scmp.lt.s32.totalorder %s746_s8, %s746_s8 }
  0x3d   :  { %p624_p13 = scmp.ne.s32.totalorder %s746_s8, %s623_s28  ;;  %p629_p1 = scmp.lt.s32.totalorder %s623_s28, %s623_s28 }
  0x3f   :  { %p630_p2 = por %p629_p1, %p628_p0 }
  0x41   :  { %p631_p3 = pnand %p630_p2, %p624_p13 }
  0x43   :  { %634 = shalt.err (!%p631_p3)
}
  0x44   :  { %63 = dma.hbm_to_vmem [thread:$0]  %s834_s3, 1024, %s746_s8, [#allocation9], %s666_s11, %s666_s11, %s667_s12  }
  0x45   :  { %657 = dma.done.wait [#allocation3], 256  }
  0x46   :  { %658 = vsyncadd [#allocation3], 4294967040 }
  0x47   :  { %659 = dma.done.wait [#allocation6], 1280  }
  0x48   :  { %660 = vsyncadd [#allocation6], 4294966016 }
  0x49   :  { %661 = dma.done.wait [#allocation9], 1024  }
  0x4a   :  { %662 = vsyncadd [#allocation9], 4294966272  ;;  %v673_v0 = vmov 0.0   ;;  %vm674_vm0 = vmmov 0   ;;  %v521_v1 = vld [vmem:[#allocation5] sm:$0xff]   ;;  %v522_v2 = vld [vmem:[#allocation5 + $0x8] sm:$0xff]  }
  0x4b   :  { %462 = vmatprep.subr.bf16.mxu0 %v673_v0  ;;  %466 = vmatprep.mubr.msk.bf16.mxu0 %vm674_vm0, %v673_v0  ;;  %v83_v3 = vld [vmem:[#allocation2] sm:$0xff]  ;;  %v84_v4 = vld [vmem:[#allocation2 + $0x8] sm:$0xff]  ;;  %vm109_vm1 = vcmask 261120   ;;  %v525_v8 = vld [vmem:[#allocation7 + $0x10] sm:$0xff]  }
  0x4c   :  { %470 = vmatprep.subr.bf16.mxu1 %v673_v0  ;;  %486 = vmatprep.mubr.msk.bf16.mxu1 %vm674_vm0, %v673_v0  ;;  %v523_v5 = vld [vmem:[#allocation7] sm:$0xff]   ;;  %v85_v6 = vpack.c.bf16 %v84_v4, %v83_v3  ;;  %v524_v7 = vld [vmem:[#allocation7 + $0x8] sm:$0xff]   ;;  %v526_v9 = vld [vmem:[#allocation7 + $0x18] sm:$0xff]  }
  0x4d   :  { %463 = vmatpush3.bf16.msra.mxu0 %v521_v1  ;;  %471 = vmatpush3.bf16.msra.mxu1 %v523_v5  ;;  %v527_v10 = vld [vmem:[#allocation7 + $0x20] sm:$0xff]   ;;  %v528_v11 = vld [vmem:[#allocation7 + $0x28] sm:$0xff]   ;;  %v529_v12 = vld [vmem:[#allocation7 + $0x30] sm:$0xff]  }
  0x4e   :  { %464 = vmatprep.subr.bf16.mxu0 %v673_v0  ;;  %472 = vmatprep.subr.bf16.mxu1 %v673_v0  ;;  %v530_v13 = vld [vmem:[#allocation7 + $0x38] sm:$0xff]   ;;  %v531_v14 = vld [vmem:[#allocation8] sm:$0xff]   ;;  %v532_v15 = vld [vmem:[#allocation8 + $0x8] sm:$0xff]  }
  0x4f   :  { %v533_v16 = vld [vmem:[#allocation8 + $0x10] sm:$0xff]   ;;  %v534_v17 = vld [vmem:[#allocation8 + $0x18] sm:$0xff]   ;;  %v535_v18 = vld [vmem:[#allocation8 + $0x20] sm:$0xff]  }
  0x50   :  { %v536_v19 = vld [vmem:[#allocation8 + $0x28] sm:$0xff]   ;;  %v417_v20 = vld [vmem:[%s835_s4] ss:$0 sm:$0xff]  ;;  %v537_v30 = vld [vmem:[#allocation8 + $0x30] sm:$0xff]  }
  0x51   :  { %465 = vmatpush3.bf16.msra.mxu0 %v522_v2  ;;  %473 = vmatpush3.bf16.msra.mxu1 %v524_v7  ;;  %v538_v31 = vld [vmem:[#allocation8 + $0x38] sm:$0xff]   ;;  %v421_v32 = vld [vmem:[%s836_s5] ss:$0 sm:$0xff]  ;;  %s675_s5 = smov [#allocation10]  }
  0x52   :  { %490 = vmatprep.subr.bf16.mxu0 %v673_v0  ;;  %474 = vmatprep.subr.bf16.mxu1 %v673_v0  ;;  %v430_v42 = vld [vmem:[%s837_s6] ss:$0 sm:$0xff]  ;;  %s403_s9 = sshll.u32 %s675_s5, 4  ;;  %s404_s9 = int_to_ptr.vmem [resolvable:$true] %s403_s9 }
  0x53   :  { %s635_s6 = scalar_lea.vmem %s404_s9, 256  ;;  %p640_p5 = scmp.lt.s32.totalorder %s404_s9, %s404_s9 }
  0x54   :  { %467 = vmatmul.mubr.msk.bf16.vlgmr.msra.gmra.mrb[0].mxu0 %vm109_vm1, %v85_v6  ;;  %p636_p4 = scmp.ne.s32.totalorder %s404_s9, %s635_s6  ;;  %p641_p6 = scmp.lt.s32.totalorder %s635_s6, %s635_s6 }
  0x55   :  { %506 = vmatprep.mubr.msk.bf16.mxu0 %vm674_vm0, %v673_v0  ;;  %475 = vmatpush3.bf16.msra.mxu1 %v525_v8 }
  0x56   :  { %476 = vmatprep.subr.bf16.mxu1 %v673_v0  ;;  %491 = vmatpush3.bf16.msra.mxu0 %v531_v14  ;;  %p642_p7 = por %p641_p6, %p640_p5 }
  0x57   :  { %492 = vmatprep.subr.bf16.mxu0 %v673_v0 }
  0x58   :  { %p643_p8 = pnand %p642_p7, %p636_p4 }
  0x59   :  { %477 = vmatpush3.bf16.msra.mxu1 %v526_v9 }
  0x5a   :  { %478 = vmatprep.subr.bf16.mxu1 %v673_v0  ;;  %493 = vmatpush3.bf16.msra.mxu0 %v532_v15 }
  0x5b   :  { %494 = vmatprep.subr.bf16.mxu0 %v673_v0 }
  0x5d   :  { %479 = vmatpush3.bf16.msra.mxu1 %v527_v10 }
  0x5e   :  { %480 = vmatprep.subr.bf16.mxu1 %v673_v0  ;;  %495 = vmatpush3.bf16.msra.mxu0 %v533_v16 }
  0x5f   :  { %496 = vmatprep.subr.bf16.mxu0 %v673_v0 }
  0x61   :  { %481 = vmatpush3.bf16.msra.mxu1 %v528_v11 }
  0x62   :  { %482 = vmatprep.subr.bf16.mxu1 %v673_v0  ;;  %497 = vmatpush3.bf16.msra.mxu0 %v534_v17 }
  0x63   :  { %498 = vmatprep.subr.bf16.mxu0 %v673_v0 }
  0x65   :  { %483 = vmatpush3.bf16.msra.mxu1 %v529_v12 }
  0x66   :  { %484 = vmatprep.subr.bf16.mxu1 %v673_v0  ;;  %499 = vmatpush3.bf16.msra.mxu0 %v535_v18 }
  0x67   :  { %500 = vmatprep.subr.bf16.mxu0 %v673_v0 }
  0x69   :  { %485 = vmatpush3.bf16.msra.mxu1 %v530_v13 }
  0x6a   :  { %501 = vmatpush3.bf16.msra.mxu0 %v536_v19 }
  0x6b   :  { %502 = vmatprep.subr.bf16.mxu0 %v673_v0 }
  0x6e   :  { %503 = vmatpush3.bf16.msra.mxu0 %v537_v30 }
  0x6f   :  { %504 = vmatprep.subr.bf16.mxu0 %v673_v0 }
  0x72   :  { %505 = vmatpush3.bf16.msra.mxu0 %v538_v31 }
 0x127   :  { %v147_v21 = vpop.f32.mrb[0].mxu0 }
 0x128   :  { %v148_v22 = vadd.f32 %v417_v20, %v147_v21  ;;  %v468_v23 = vpop.f32.mrb[1].mxu0 }
 0x129   :  { %v150_v24 = vpop.f32.mrb[2].mxu0 }
 0x12a   :  { %v151_v25 = vadd.f32 %v417_v20, %v150_v24  ;;  %v469_v26 = vpop.f32.mrb[3].mxu0  ;;  %v154_v27 = vmax.f32 %v148_v22, 0.0 }
 0x12c   :  { %v155_v28 = vmax.f32 %v151_v25, 0.0 }
 0x12e   :  { %v156_v29 = vpack.c.bf16 %v155_v28, %v154_v27 }
 0x130   :  { %487 = vmatmul.mubr.bf16.vlgmr.msra.gmra.mrb[0].mxu1 %v156_v29 }
 0x203   :  { %v262_v33 = vpop.f32.mrb[0].mxu1 }
 0x204   :  { %v263_v34 = vadd.f32 %v421_v32, %v262_v33  ;;  %v488_v35 = vpop.f32.mrb[1].mxu1 }
 0x205   :  { %v265_v36 = vpop.f32.mrb[2].mxu1 }
 0x206   :  { %v266_v37 = vadd.f32 %v421_v32, %v265_v36  ;;  %v489_v38 = vpop.f32.mrb[3].mxu1  ;;  %v269_v39 = vmax.f32 %v263_v34, 0.0 }
 0x208   :  { %v270_v40 = vmax.f32 %v266_v37, 0.0 }
 0x20a   :  { %v271_v41 = vpack.c.bf16 %v270_v40, %v269_v39 }
 0x20c   :  { %507 = vmatmul.mubr.bf16.vlgmr.msra.gmra.mrb[4].mxu0 %v271_v41 }
 0x2df   :  { %v377_v43 = vpop.f32.mrb[4].mxu0 }
 0x2e0   :  { %v378_v44 = vadd.f32 %v430_v42, %v377_v43  ;;  %v508_v45 = vpop.f32.mrb[5].mxu0 }
 0x2e1   :  { %v380_v46 = vpop.f32.mrb[6].mxu0 }
 0x2e2   :  { %v439_v47 = vmul.f32 -1.442695, %v378_v44  ;;  %v381_v48 = vadd.f32 %v430_v42, %v380_v46  ;;  %v509_v49 = vpop.f32.mrb[7].mxu0 }
 0x2e4   :  { %539 = vpow2.f32 %v439_v47  ;;  %v440_v50 = vmul.f32 -1.442695, %v381_v48 }
 0x2e6   :  { %541 = vpow2.f32 %v440_v50 }
 0x2ee   :  { %v540_v51 = vpop.eup %539 }
 0x2ef   :  { %v390_v52 = vadd.f32 1.0, %v540_v51 }
 0x2f0   :  { %v542_v53 = vpop.eup %541 }
 0x2f1   :  { %543 = vrcp.f32 %v390_v52  ;;  %v391_v54 = vadd.f32 1.0, %v542_v53 }
 0x2f3   :  { %545 = vrcp.f32 %v391_v54 }
 0x2fb   :  { %v544_v55 = vpop.eup %543 }
 0x2fc   :  { %396 = vst [vmem:[#allocation10] sm:$0xff] %v544_v55 }
 0x2fd   :  { %v546_v56 = vpop.eup %545 }
 0x2fe   :  { %397 = vst [vmem:[#allocation10 + $0x8] sm:$0xff] %v546_v56 }
 0x2ff   :  { %646 = shalt.err (!%p643_p8)
}
 0x300   :  { %s647_s14 = scalar_lea.hbm %s838_s7, 256 }
 0x301   :  { %p648_p9 = scmp.ne.s32.totalorder %s838_s7, %s647_s14  ;;  %p651_p10 = scmp.lt.u32.totalorder %s647_s14, %s838_s7 }
 0x303   :  { %p653_p11 = pnand %p651_p10, %p648_p9 }
 0x305   :  { %656 = shalt.err (!%p653_p11)
}
 0x306   :  { %409 = dma.vmem_to_hbm [thread:$0]  %s404_s9, 256, %s838_s7, [#allocation4], %s669_s1, %s669_s1, %s670_s25  }
 0x307   :  { %663 = dma.done.wait [#allocation4], 256  }
 0x308   :  { %664 = vsyncadd [#allocation4], 4294967040 }
 0x309   :  { %413 = vsyncpa [#allocation3], 1 }
 0x30a   :  { %414 = vsyncpa [#allocation6], 1 }
 0x30b   :  { %415 = vsyncpa [#allocation9], 1 }
 0x30c   :  { %416 = vsyncpa [#allocation4], 1 }

// kernel: tpu_custom_call.1
= control target key start
LH: loop header
LB: loop body
LE: loop exit
PB: predicated region body
PF: predicated region fallthrough
CT: control target
= control target key end

     0   :  { %12 = vsyncpa [#allocation3], 0  ;;  %s831_s0 = inlined_call_operand.hbm [shape: f32[16,32], index: 0, kind: input, shape index: {}]   ;;  %s832_s1 = inlined_call_operand.hbm [shape: bf16[32,128], index: 1, kind: input, shape index: {}]   ;;  %s833_s2 = inlined_call_operand.hbm [shape: bf16[128,128], index: 2, kind: input, shape index: {}]   ;;  %s834_s3 = inlined_call_operand.hbm [shape: bf16[128,128], index: 3, kind: input, shape index: {}]   ;;  %s835_s4 = inlined_call_operand.vmem [shape: f32[1,128], index: 4, kind: input, shape index: {}]   ;;  %s836_s5 = inlined_call_operand.vmem [shape: f32[1,128], index: 5, kind: input, shape index: {}]   ;;  %s837_s6 = inlined_call_operand.vmem [shape: f32[1,128], index: 6, kind: input, shape index: {}]   ;;  %s838_s7 = inlined_call_operand.hbm [shape: f32[16,128], index: 7, kind: output, shape index: {}]  }
   0x1   :  { %13 = vsyncpa [#allocation6], 0 }
   0x2   :  { %14 = vsyncpa [#allocation9], 0 }
   0x3   :  { %15 = vsyncpa [#allocation4], 0  ;;  %s665_s24 = smov [#allocation5]   ;;  %s547_s28 = scalar_lea.hbm %s832_s1, 256 }
   0x4   :  { %s33_s25 = sshll.u32 %s665_s24, 4  ;;  %p548_p0 = scmp.ne.s32.totalorder %s832_s1, %s547_s28  ;;  %s34_s25 = int_to_ptr.vmem [resolvable:$true] %s33_s25 }
   0x5   :  { %p551_p1 = scmp.lt.u32.totalorder %s547_s28, %s832_s1 }
   0x7   :  { %p553_p2 = pnand %p551_p1, %p548_p0 }
   0x9   :  { %556 = shalt.err (!%p553_p2)
}
   0xa   :  { %s557_s10 = scalar_lea.vmem %s34_s25, 256  ;;  %p562_p4 = scmp.lt.s32.totalorder %s34_s25, %s34_s25 }
   0xb   :  { %p558_p3 = scmp.ne.s32.totalorder %s34_s25, %s557_s10  ;;  %p563_p5 = scmp.lt.s32.totalorder %s557_s10, %s557_s10 }
   0xd   :  { %p564_p6 = por %p563_p5, %p562_p4 }
   0xf   :  { %p565_p7 = pnand %p564_p6, %p558_p3 }
  0x11   :  { %568 = shalt.err (!%p565_p7)
}
  0x12   :  { %s666_s11 = smov 64   ;;  %s667_s12 = smov 4  }
  0x13   :  { %39 = dma.hbm_to_vmem [thread:$0]  %s832_s1, 256, %s34_s25, [#allocation6], %s666_s11, %s666_s11, %s667_s12  }
  0x14   :  { %s668_s15 = smov [#allocation2]   ;;  %s569_s19 = scalar_lea.hbm %s831_s0, 256 }
  0x15   :  { %s21_s16 = sshll.u32 %s668_s15, 4  ;;  %p570_p8 = scmp.ne.s32.totalorder %s831_s0, %s569_s19  ;;  %s22_s16 = int_to_ptr.vmem [resolvable:$true] %s21_s16 }
  0x16   :  { %p573_p9 = scmp.lt.u32.totalorder %s569_s19, %s831_s0 }
  0x18   :  { %p575_p10 = pnand %p573_p9, %p570_p8 }
  0x1a   :  { %578 = shalt.err (!%p575_p10)
}
  0x1b   :  { %s579_s24 = scalar_lea.vmem %s22_s16, 256  ;;  %p584_p12 = scmp.lt.s32.totalorder %s22_s16, %s22_s16 }
  0x1c   :  { %p580_p11 = scmp.ne.s32.totalorder %s22_s16, %s579_s24  ;;  %p585_p13 = scmp.lt.s32.totalorder %s579_s24, %s579_s24 }
  0x1e   :  { %p586_p0 = por %p585_p13, %p584_p12 }
  0x20   :  { %p587_p1 = pnand %p586_p0, %p580_p11 }
  0x22   :  { %590 = shalt.err (!%p587_p1)
}
  0x23   :  { %s669_s1 = smov 128   ;;  %s670_s25 = smov 8  }
  0x24   :  { %27 = dma.hbm_to_vmem [thread:$0]  %s831_s0, 256, %s22_s16, [#allocation3], %s669_s1, %s669_s1, %s670_s25  }
  0x25   :  { %s671_s28 = smov [#allocation7]   ;;  %s672_s30 = smov [#allocation8]  }
  0x26   :  { %s45_s29 = sshll.u32 %s671_s28, 4  ;;  %s57_s8 = sshll.u32 %s672_s30, 4  ;;  %s46_s29 = int_to_ptr.vmem [resolvable:$true] %s45_s29  ;;  %s746_s8 = int_to_ptr.vmem [resolvable:$true] %s57_s8 }
  0x27   :  { %s591_s13 = scalar_lea.hbm %s833_s2, 1024 }
  0x28   :  { %p592_p2 = scmp.ne.s32.totalorder %s833_s2, %s591_s13  ;;  %p595_p3 = scmp.lt.u32.totalorder %s591_s13, %s833_s2 }
  0x2a   :  { %p597_p4 = pnand %p595_p3, %p592_p2 }
  0x2c   :  { %600 = shalt.err (!%p597_p4)
}
  0x2d   :  { %s601_s0 = scalar_lea.vmem %s46_s29, 1024  ;;  %p606_p6 = scmp.lt.s32.totalorder %s46_s29, %s46_s29 }
  0x2e   :  { %p602_p5 = scmp.ne.s32.totalorder %s46_s29, %s601_s0  ;;  %p607_p7 = scmp.lt.s32.totalorder %s601_s0, %s601_s0 }
  0x30   :  { %p608_p8 = por %p607_p7, %p606_p6 }
  0x32   :  { %p609_p9 = pnand %p608_p8, %p602_p5 }
  0x34   :  { %612 = shalt.err (!%p609_p9)
}
  0x35   :  { %51 = dma.hbm_to_vmem [thread:$0]  %s833_s2, 1024, %s46_s29, [#allocation6], %s666_s11, %s666_s11, %s667_s12  }
  0x36   :  { %s613_s22 = scalar_lea.hbm %s834_s3, 1024 }
  0x37   :  { %p614_p10 = scmp.ne.s32.totalorder %s834_s3, %s613_s22  ;;  %p617_p11 = scmp.lt.u32.totalorder %s613_s22, %s834_s3 }
  0x39   :  { %p619_p12 = pnand %p617_p11, %p614_p10 }
  0x3b   :  { %622 = shalt.err (!%p619_p12)
}
  0x3c   :  { %s623_s28 = scalar_lea.vmem %s746_s8, 1024  ;;  %p628_p0 = scmp.lt.s32.totalorder %s746_s8, %s746_s8 }
  0x3d   :  { %p624_p13 = scmp.ne.s32.totalorder %s746_s8, %s623_s28  ;;  %p629_p1 = scmp.lt.s32.totalorder %s623_s28, %s623_s28 }
  0x3f   :  { %p630_p2 = por %p629_p1, %p628_p0 }
  0x41   :  { %p631_p3 = pnand %p630_p2, %p624_p13 }
  0x43   :  { %634 = shalt.err (!%p631_p3)
}
  0x44   :  { %63 = dma.hbm_to_vmem [thread:$0]  %s834_s3, 1024, %s746_s8, [#allocation9], %s666_s11, %s666_s11, %s667_s12  }
  0x45   :  { %657 = dma.done.wait [#allocation3], 256  }
  0x46   :  { %658 = vsyncadd [#allocation3], 4294967040 }
  0x47   :  { %659 = dma.done.wait [#allocation6], 1280  }
  0x48   :  { %660 = vsyncadd [#allocation6], 4294966016 }
  0x49   :  { %661 = dma.done.wait [#allocation9], 1024  }
  0x4a   :  { %662 = vsyncadd [#allocation9], 4294966272  ;;  %v673_v0 = vmov 0.0   ;;  %vm674_vm0 = vmmov 0   ;;  %v521_v1 = vld [vmem:[#allocation5] sm:$0xff]   ;;  %v522_v2 = vld [vmem:[#allocation5 + $0x8] sm:$0xff]  }
  0x4b   :  { %462 = vmatprep.subr.bf16.mxu0 %v673_v0  ;;  %466 = vmatprep.mubr.msk.bf16.mxu0 %vm674_vm0, %v673_v0  ;;  %v83_v3 = vld [vmem:[#allocation2] sm:$0xff]  ;;  %v84_v4 = vld [vmem:[#allocation2 + $0x8] sm:$0xff]  ;;  %vm109_vm1 = vcmask 261120   ;;  %v525_v8 = vld [vmem:[#allocation7 + $0x10] sm:$0xff]  }
  0x4c   :  { %470 = vmatprep.subr.bf16.mxu1 %v673_v0  ;;  %486 = vmatprep.mubr.msk.bf16.mxu1 %vm674_vm0, %v673_v0  ;;  %v523_v5 = vld [vmem:[#allocation7] sm:$0xff]   ;;  %v85_v6 = vpack.c.bf16 %v84_v4, %v83_v3  ;;  %v524_v7 = vld [vmem:[#allocation7 + $0x8] sm:$0xff]   ;;  %v526_v9 = vld [vmem:[#allocation7 + $0x18] sm:$0xff]  }
  0x4d   :  { %463 = vmatpush3.bf16.msra.mxu0 %v521_v1  ;;  %471 = vmatpush3.bf16.msra.mxu1 %v523_v5  ;;  %v527_v10 = vld [vmem:[#allocation7 + $0x20] sm:$0xff]   ;;  %v528_v11 = vld [vmem:[#allocation7 + $0x28] sm:$0xff]   ;;  %v529_v12 = vld [vmem:[#allocation7 + $0x30] sm:$0xff]  }
  0x4e   :  { %464 = vmatprep.subr.bf16.mxu0 %v673_v0  ;;  %472 = vmatprep.subr.bf16.mxu1 %v673_v0  ;;  %v530_v13 = vld [vmem:[#allocation7 + $0x38] sm:$0xff]   ;;  %v531_v14 = vld [vmem:[#allocation8] sm:$0xff]   ;;  %v532_v15 = vld [vmem:[#allocation8 + $0x8] sm:$0xff]  }
  0x4f   :  { %v533_v16 = vld [vmem:[#allocation8 + $0x10] sm:$0xff]   ;;  %v534_v17 = vld [vmem:[#allocation8 + $0x18] sm:$0xff]   ;;  %v535_v18 = vld [vmem:[#allocation8 + $0x20] sm:$0xff]  }
  0x50   :  { %v536_v19 = vld [vmem:[#allocation8 + $0x28] sm:$0xff]   ;;  %v417_v20 = vld [vmem:[%s835_s4] ss:$0 sm:$0xff]  ;;  %v537_v30 = vld [vmem:[#allocation8 + $0x30] sm:$0xff]  }
  0x51   :  { %465 = vmatpush3.bf16.msra.mxu0 %v522_v2  ;;  %473 = vmatpush3.bf16.msra.mxu1 %v524_v7  ;;  %v538_v31 = vld [vmem:[#allocation8 + $0x38] sm:$0xff]   ;;  %v421_v32 = vld [vmem:[%s836_s5] ss:$0 sm:$0xff]  ;;  %s675_s5 = smov [#allocation10]  }
  0x52   :  { %490 = vmatprep.subr.bf16.mxu0 %v673_v0  ;;  %474 = vmatprep.subr.bf16.mxu1 %v673_v0  ;;  %v430_v42 = vld [vmem:[%s837_s6] ss:$0 sm:$0xff]  ;;  %s403_s9 = sshll.u32 %s675_s5, 4  ;;  %s404_s9 = int_to_ptr.vmem [resolvable:$true] %s403_s9 }
  0x53   :  { %s635_s6 = scalar_lea.vmem %s404_s9, 256  ;;  %p640_p5 = scmp.lt.s32.totalorder %s404_s9, %s404_s9 }
  0x54   :  { %467 = vmatmul.mubr.msk.bf16.vlgmr.msra.gmra.mrb[0].mxu0 %vm109_vm1, %v85_v6  ;;  %p636_p4 = scmp.ne.s32.totalorder %s404_s9, %s635_s6  ;;  %p641_p6 = scmp.lt.s32.totalorder %s635_s6, %s635_s6 }
  0x55   :  { %506 = vmatprep.mubr.msk.bf16.mxu0 %vm674_vm0, %v673_v0  ;;  %475 = vmatpush3.bf16.msra.mxu1 %v525_v8 }
  0x56   :  { %476 = vmatprep.subr.bf16.mxu1 %v673_v0  ;;  %491 = vmatpush3.bf16.msra.mxu0 %v531_v14  ;;  %p642_p7 = por %p641_p6, %p640_p5 }
  0x57   :  { %492 = vmatprep.subr.bf16.mxu0 %v673_v0 }
  0x58   :  { %p643_p8 = pnand %p642_p7, %p636_p4 }
  0x59   :  { %477 = vmatpush3.bf16.msra.mxu1 %v526_v9 }
  0x5a   :  { %478 = vmatprep.subr.bf16.mxu1 %v673_v0  ;;  %493 = vmatpush3.bf16.msra.mxu0 %v532_v15 }
  0x5b   :  { %494 = vmatprep.subr.bf16.mxu0 %v673_v0 }
  0x5d   :  { %479 = vmatpush3.bf16.msra.mxu1 %v527_v10 }
  0x5e   :  { %480 = vmatprep.subr.bf16.mxu1 %v673_v0  ;;  %495 = vmatpush3.bf16.msra.mxu0 %v533_v16 }
  0x5f   :  { %496 = vmatprep.subr.bf16.mxu0 %v673_v0 }
  0x61   :  { %481 = vmatpush3.bf16.msra.mxu1 %v528_v11 }
  0x62   :  { %482 = vmatprep.subr.bf16.mxu1 %v673_v0  ;;  %497 = vmatpush3.bf16.msra.mxu0 %v534_v17 }
  0x63   :  { %498 = vmatprep.subr.bf16.mxu0 %v673_v0 }
  0x65   :  { %483 = vmatpush3.bf16.msra.mxu1 %v529_v12 }
  0x66   :  { %484 = vmatprep.subr.bf16.mxu1 %v673_v0  ;;  %499 = vmatpush3.bf16.msra.mxu0 %v535_v18 }
  0x67   :  { %500 = vmatprep.subr.bf16.mxu0 %v673_v0 }
  0x69   :  { %485 = vmatpush3.bf16.msra.mxu1 %v530_v13 }
  0x6a   :  { %501 = vmatpush3.bf16.msra.mxu0 %v536_v19 }
  0x6b   :  { %502 = vmatprep.subr.bf16.mxu0 %v673_v0 }
  0x6e   :  { %503 = vmatpush3.bf16.msra.mxu0 %v537_v30 }
  0x6f   :  { %504 = vmatprep.subr.bf16.mxu0 %v673_v0 }
  0x72   :  { %505 = vmatpush3.bf16.msra.mxu0 %v538_v31 }
 0x127   :  { %v147_v21 = vpop.f32.mrb[0].mxu0 }
 0x128   :  { %v148_v22 = vadd.f32 %v417_v20, %v147_v21  ;;  %v468_v23 = vpop.f32.mrb[1].mxu0 }
 0x129   :  { %v150_v24 = vpop.f32.mrb[2].mxu0 }
 0x12a   :  { %v151_v25 = vadd.f32 %v417_v20, %v150_v24  ;;  %v469_v26 = vpop.f32.mrb[3].mxu0  ;;  %v154_v27 = vmax.f32 %v148_v22, 0.0 }
 0x12c   :  { %v155_v28 = vmax.f32 %v151_v25, 0.0 }
 0x12e   :  { %v156_v29 = vpack.c.bf16 %v155_v28, %v154_v27 }
 0x130   :  { %487 = vmatmul.mubr.bf16.vlgmr.msra.gmra.mrb[0].mxu1 %v156_v29 }
 0x203   :  { %v262_v33 = vpop.f32.mrb[0].mxu1 }
 0x204   :  { %v263_v34 = vadd.f32 %v421_v32, %v262_v33  ;;  %v488_v35 = vpop.f32.mrb[1].mxu1 }
 0x205   :  { %v265_v36 = vpop.f32.mrb[2].mxu1 }
 0x206   :  { %v266_v37 = vadd.f32 %v421_v32, %v265_v36  ;;  %v489_v38 = vpop.f32.mrb[3].mxu1  ;;  %v269_v39 = vmax.f32 %v263_v34, 0.0 }
 0x208   :  { %v270_v40 = vmax.f32 %v266_v37, 0.0 }
 0x20a   :  { %v271_v41 = vpack.c.bf16 %v270_v40, %v269_v39 }
 0x20c   :  { %507 = vmatmul.mubr.bf16.vlgmr.msra.gmra.mrb[4].mxu0 %v271_v41 }
 0x2df   :  { %v377_v43 = vpop.f32.mrb[4].mxu0 }
 0x2e0   :  { %v378_v44 = vadd.f32 %v430_v42, %v377_v43  ;;  %v508_v45 = vpop.f32.mrb[5].mxu0 }
 0x2e1   :  { %v380_v46 = vpop.f32.mrb[6].mxu0 }
 0x2e2   :  { %v439_v47 = vmul.f32 -1.442695, %v378_v44  ;;  %v381_v48 = vadd.f32 %v430_v42, %v380_v46  ;;  %v509_v49 = vpop.f32.mrb[7].mxu0 }
 0x2e4   :  { %539 = vpow2.f32 %v439_v47  ;;  %v440_v50 = vmul.f32 -1.442695, %v381_v48 }
 0x2e6   :  { %541 = vpow2.f32 %v440_v50 }
 0x2ee   :  { %v540_v51 = vpop.eup %539 }
 0x2ef   :  { %v390_v52 = vadd.f32 1.0, %v540_v51 }
 0x2f0   :  { %v542_v53 = vpop.eup %541 }
 0x2f1   :  { %543 = vrcp.f32 %v390_v52  ;;  %v391_v54 = vadd.f32 1.0, %v542_v53 }
 0x2f3   :  { %545 = vrcp.f32 %v391_v54 }
 0x2fb   :  { %v544_v55 = vpop.eup %543 }
 0x2fc   :  { %396 = vst [vmem:[#allocation10] sm:$0xff] %v544_v55 }
 0x2fd   :  { %v546_v56 = vpop.eup %545 }
 0x2fe   :  { %397 = vst [vmem:[#allocation10 + $0x8] sm:$0xff] %v546_v56 }
 0x2ff   :  { %646 = shalt.err (!%p643_p8)
}
 0x300   :  { %s647_s14 = scalar_lea.hbm %s838_s7, 256 }
 0x301   :  { %p648_p9 = scmp.ne.s32.totalorder %s838_s7, %s647_s14  ;;  %p651_p10 = scmp.lt.u32.totalorder %s647_s14, %s838_s7 }
 0x303   :  { %p653_p11 = pnand %p651_p10, %p648_p9 }
 0x305   :  { %656 = shalt.err (!%p653_p11)
}
 0x306   :  { %409 = dma.vmem_to_hbm [thread:$0]  %s404_s9, 256, %s838_s7, [#allocation4], %s669_s1, %s669_s1, %s670_s25  }
 0x307   :  { %663 = dma.done.wait [#allocation4], 256  }
 0x308   :  { %664 = vsyncadd [#allocation4], 4294967040 }
 0x309   :  { %413 = vsyncpa [#allocation3], 1 }
 0x30a   :  { %414 = vsyncpa [#allocation6], 1 }
 0x30b   :  { %415 = vsyncpa [#allocation9], 1 }
 0x30c   :  { %416 = vsyncpa [#allocation4], 1 }

</bundles_post_ra>
